<compile_context>
chip_gen: v7x
topology: tpu7x:2x2x1
jax: 0.10.0
libtpu: 0.0.40
codegen_flags: <defaults>
</compile_context>

<pallas_src>
import functools

import jax
import jax.numpy as jnp
from jax import lax
from jax.experimental import pallas as pl
from jax.experimental.pallas import tpu as pltpu


# --------------------------------------------------------------------------- #
# Kernel 1: hoisted column-phase projections (one streamed pass over X).
#   v_out = X @ V                    (N, F)
#   s_out = X @ [W@a[:F] | Q@a[F:]]  (N, 2)   -> s1 = col 0, s2 = col 1
# --------------------------------------------------------------------------- #
def gat_project_kernel(x_ref, vw_ref, aw_ref, v_out_ref, s_out_ref):
    x = x_ref[...]
    v_out_ref[...] = jnp.dot(x, vw_ref[...],
                             preferred_element_type=jnp.float32)
    s_out_ref[...] = jnp.dot(x, aw_ref[...],
                             preferred_element_type=jnp.float32)


# --------------------------------------------------------------------------- #
# Kernel 2: per-row-tile masked attention softmax + aggregation.
# --------------------------------------------------------------------------- #
def gat_attention_kernel(s1_ref, s2_ref, adj_ref, v_ref, out_ref, *,
                         alpha, concat):
    e = s1_ref[...] + s2_ref[...]                            # (TM, N)
    e = jnp.where(e > 0, e, jnp.float32(alpha) * e)          # LeakyReLU
    e = jnp.where(adj_ref[...] > 0, e, jnp.float32(-9e15))   # adjacency mask

    m = jnp.max(e, axis=-1, keepdims=True)                   # row softmax (stable)
    p = jnp.exp(e - m)                                       # unnormalized
    denom = jnp.sum(p, axis=-1, keepdims=True)               # (TM, 1)
    # TODO(synk): training-mode attention dropout omitted (eval semantics: identity).

    h = jnp.dot(p, v_ref[...], preferred_element_type=jnp.float32)   # (TM, F)
    h = h * pl.reciprocal(denom, approx=False)               # deferred normalization
    if concat:                                               # ELU(alpha=1)
        h = jnp.where(h > 0.0, h, jnp.exp(jnp.minimum(h, 0.0)) - 1.0)
    out_ref[...] = h.astype(out_ref.dtype)


def gat_forward(x, adj, params, *, alpha, concat=True, row_tile=None):
    """Matches GraphAttentionLayer.forward(input, adj) in eval mode.

    `adj` is streamed in whatever dtype it is passed in (int8/bool recommended:
    only `adj > 0` is used), so the dominant N^2 HBM stream stays narrow.
    """
    x = x.astype(jnp.float32)
    n, f_in = x.shape
    f_out = params["W"].shape[1]
    assert adj.shape == (n, n)

    if row_tile is None:
        row_tile = n if n <= 256 else 256
    assert n % row_tile == 0, "row_tile must divide N"
    assert row_tile == n or row_tile % 8 == 0, "row_tile must be 8-aligned"
    if jnp.dtype(adj.dtype).itemsize == 1 and row_tile != n:
        assert row_tile % 32 == 0, "int8/bool adj needs 32-aligned row_tile"

    hp = lax.Precision.HIGHEST
    w = params["W"].astype(jnp.float32)                      # (F_in, F)
    q = params["Q"].astype(jnp.float32)                      # (F_in, F)
    v = params["V"].astype(jnp.float32)                      # (F_in, F)
    a = params["a"].astype(jnp.float32)                      # (2F, 1)
    # Fold the attention vector into the projections (tiny one-time GEMVs).
    aw = jnp.concatenate(
        [jnp.dot(w, a[:f_out], precision=hp),
         jnp.dot(q, a[f_out:], precision=hp)], axis=1)       # (F_in, 2)

    grid = (n // row_tile,)

    # ---- column phase: one streamed pass over X --------------------------- #
    v_proj, s12 = pl.pallas_call(
        gat_project_kernel,
        out_shape=(jax.ShapeDtypeStruct((n, f_out), jnp.float32),
                   jax.ShapeDtypeStruct((n, 2), jnp.float32)),
        grid_spec=pltpu.PrefetchScalarGridSpec(
            num_scalar_prefetch=0,
            grid=grid,
            in_specs=[
                pl.BlockSpec((row_tile, f_in), lambda i: (i, 0)),   # X row tile
                pl.BlockSpec((f_in, f_out), lambda i: (0, 0)),      # V
                pl.BlockSpec((f_in, 2), lambda i: (0, 0)),          # [W@a1 | Q@a2]
            ],
            out_specs=(
                pl.BlockSpec((row_tile, f_out), lambda i: (i, 0)),  # X @ V
                pl.BlockSpec((row_tile, 2), lambda i: (i, 0)),      # [s1 | s2]
            ),
        ),
        compiler_params=pltpu.CompilerParams(
            dimension_semantics=("parallel",),
        ),
    )(x, v, aw)

    s1 = s12[:, 0:1]                                         # (N, 1)
    s2 = s12[:, 1:2].T                                       # (1, N) lane-dense

    # ---- attention phase: grid over independent row tiles ----------------- #
    adj_bytes = jnp.dtype(adj.dtype).itemsize
    vmem_est = (2 * row_tile * n * adj_bytes                 # adj double buffer
                + 2 * row_tile * 4                           # s1 double buffer
                + 2 * n * 4                                  # s2 (resident)
                + n * f_out * 4                              # V proj (resident)
                + 2 * row_tile * f_out * 4)                  # out double buffer
    vmem_limit = max(2 * vmem_est + (4 << 20), 16 << 20)
    vmem_limit = min(vmem_limit, 112 << 20)

    out = pl.pallas_call(
        functools.partial(gat_attention_kernel,
                          alpha=float(alpha), concat=bool(concat)),
        out_shape=jax.ShapeDtypeStruct((n, f_out), jnp.float32),
        grid_spec=pltpu.PrefetchScalarGridSpec(
            num_scalar_prefetch=0,
            grid=grid,
            in_specs=[
                pl.BlockSpec((row_tile, 1), lambda i: (i, 0)),      # s1 row tile
                pl.BlockSpec((1, n), lambda i: (0, 0)),             # s2 (resident)
                pl.BlockSpec((row_tile, n), lambda i: (i, 0)),      # adj row tile
                pl.BlockSpec((n, f_out), lambda i: (0, 0)),         # V proj (resident)
            ],
            out_specs=pl.BlockSpec((row_tile, f_out), lambda i: (i, 0)),
        ),
        compiler_params=pltpu.CompilerParams(
            dimension_semantics=("parallel",),                      # megacore-friendly
            vmem_limit_bytes=int(vmem_limit),
        ),
    )(s1, s2, adj, v_proj)
    return out


def xavier_uniform(key, shape, gain=1.414):
    fan_in, fan_out = shape
    bound = gain * (6.0 / (fan_in + fan_out)) ** 0.5
    return jax.random.uniform(key, shape, jnp.float32,
                              minval=-bound, maxval=bound)


def _gat_reference(x, adj, params, *, alpha, concat):
    """Pure-JAX transcription of the PyTorch forward (incl. N*N a_input)."""
    W, Q, V, a = params["W"], params["Q"], params["V"], params["a"]
    f_out = W.shape[1]
    hp = lax.Precision.HIGHEST
    h = jnp.dot(x, W, precision=hp)
    q = jnp.dot(x, Q, precision=hp)
    v = jnp.dot(x, V, precision=hp)
    n = h.shape[0]
    a_input = jnp.concatenate(
        [jnp.repeat(h, n, axis=0), jnp.tile(q, (n, 1))], axis=1
    ).reshape(n, n, 2 * f_out)
    e = jax.nn.leaky_relu(
        jnp.squeeze(jnp.matmul(a_input, a, precision=hp), axis=2),
        negative_slope=alpha)
    att = jnp.where(adj > 0, e, -9e15)
    att = jax.nn.softmax(att, axis=1)
    h_prime = jnp.dot(att, v, precision=hp)
    return jax.nn.elu(h_prime) if concat else h_prime


if __name__ == "__main__":
    # Small shapes consistent with the module: input (N, in_features), adj (N, N)
    n_nodes, in_features, out_features = 128, 64, 32
    alpha, concat = 0.2, True

    key = jax.random.PRNGKey(0)
    k_x, k_adj, k_w, k_q, k_v, k_a = jax.random.split(key, 6)

    x = jax.random.normal(k_x, (n_nodes, in_features), jnp.float32)
    adj = jax.random.uniform(k_adj, (n_nodes, n_nodes)) < 0.3
    adj = jnp.logical_or(adj, jnp.eye(n_nodes, dtype=bool))   # self loops
    adj = adj.astype(jnp.int8)   # narrow adjacency stream; only adj > 0 is used

    params = {
        "W": xavier_uniform(k_w, (in_features, out_features)),
        "Q": xavier_uniform(k_q, (in_features, out_features)),
        "V": xavier_uniform(k_v, (in_features, out_features)),
        "a": xavier_uniform(k_a, (2 * out_features, 1)),
    }

    out = gat_forward(x, adj, params, alpha=alpha, concat=concat, row_tile=32)
    jax.block_until_ready(out)

    ref = _gat_reference(x, adj, params, alpha=alpha, concat=concat)
    assert out.shape == (n_nodes, out_features)
    max_err = float(jnp.max(jnp.abs(out - ref)))
    assert jnp.allclose(out, ref, rtol=1e-3, atol=1e-3), max_err

    print("KERNEL_OK")
</pallas_src>

<mosaic_0001>
module attributes {stable_mosaic.version = 11 : i64} {
  func.func @gat_project_kernel(%arg0: i32, %arg1: memref<32x64xf32, #tpu.memory_space<vmem>>, %arg2: memref<64x32xf32, #tpu.memory_space<vmem>>, %arg3: memref<64x2xf32, #tpu.memory_space<vmem>>, %arg4: memref<32x32xf32, #tpu.memory_space<vmem>>, %arg5: memref<32x2xf32, #tpu.memory_space<vmem>>) attributes {dimension_semantics = [#tpu.dimension_semantics<parallel>], iteration_bounds = array<i64: 4>, scalar_prefetch = 0 : i64, scratch_operands = 0 : i64, tpu.core_type = #tpu.core_type<tc>, window_params = [{transform_indices = @transform_0, window_bounds = array<i64: 32, 64>}, {pipeline_mode = #tpu.pipeline_mode<synchronous>, transform_indices = @transform_1, window_bounds = array<i64: 64, 32>}, {pipeline_mode = #tpu.pipeline_mode<synchronous>, transform_indices = @transform_2, window_bounds = array<i64: 64, 2>}, {transform_indices = @transform_3, window_bounds = array<i64: 32, 32>}, {transform_indices = @transform_4, window_bounds = array<i64: 32, 2>}]} {
    %c0 = arith.constant 0 : index
    %c0_0 = arith.constant 0 : index
    %0 = vector.load %arg1[%c0, %c0_0] : memref<32x64xf32, #tpu.memory_space<vmem>>, vector<32x64xf32>
    %c0_1 = arith.constant 0 : index
    %c0_2 = arith.constant 0 : index
    %1 = vector.load %arg2[%c0_1, %c0_2] : memref<64x32xf32, #tpu.memory_space<vmem>>, vector<64x32xf32>
    %cst = arith.constant dense<0.000000e+00> : vector<32x32xf32>
    %2 = tpu.matmul %0, %1, %cst {dimension_numbers = #tpu.dot_dimension_numbers<[1], [0], [0], [1], [0, 0, 1, 1], [], []>} : vector<32x64xf32>, vector<64x32xf32>, vector<32x32xf32> -> vector<32x32xf32>
    %c0_3 = arith.constant 0 : index
    %c0_4 = arith.constant 0 : index
    %3 = vector.load %arg4[%c0_3, %c0_4] : memref<32x32xf32, #tpu.memory_space<vmem>>, vector<32x32xf32>
    tpu.vector_store %arg4[%c0_3, %c0_4], %2 {strides = array<i32>} : memref<32x32xf32, #tpu.memory_space<vmem>>, vector<32x32xf32>,
    %c0_5 = arith.constant 0 : index
    %c0_6 = arith.constant 0 : index
    %4 = vector.load %arg3[%c0_5, %c0_6] : memref<64x2xf32, #tpu.memory_space<vmem>>, vector<64x2xf32>
    %cst_7 = arith.constant dense<0.000000e+00> : vector<32x2xf32>
    %5 = tpu.matmul %0, %4, %cst_7 {dimension_numbers = #tpu.dot_dimension_numbers<[1], [0], [0], [1], [0, 0, 1, 1], [], []>} : vector<32x64xf32>, vector<64x2xf32>, vector<32x2xf32> -> vector<32x2xf32>
    %c0_8 = arith.constant 0 : index
    %c0_9 = arith.constant 0 : index
    %6 = vector.load %arg5[%c0_8, %c0_9] : memref<32x2xf32, #tpu.memory_space<vmem>>, vector<32x2xf32>
    tpu.vector_store %arg5[%c0_8, %c0_9], %5 {strides = array<i32>} : memref<32x2xf32, #tpu.memory_space<vmem>>, vector<32x2xf32>,
    return
  }
  func.func @transform_0(%arg0: i32) -> (i32, i32) {
    %c0_i32 = arith.constant 0 : i32
    %c0_i32_0 = arith.constant 0 : i32
    return %arg0, %c0_i32 : i32, i32
  }
  func.func @transform_1(%arg0: i32) -> (i32, i32) {
    %c0_i32 = arith.constant 0 : i32
    %c0_i32_0 = arith.constant 0 : i32
    %c0_i32_1 = arith.constant 0 : i32
    return %c0_i32, %c0_i32_0 : i32, i32
  }
  func.func @transform_2(%arg0: i32) -> (i32, i32) {
    %c0_i32 = arith.constant 0 : i32
    %c0_i32_0 = arith.constant 0 : i32
    %c0_i32_1 = arith.constant 0 : i32
    return %c0_i32, %c0_i32_0 : i32, i32
  }
  func.func @transform_3(%arg0: i32) -> (i32, i32) {
    %c0_i32 = arith.constant 0 : i32
    %c0_i32_0 = arith.constant 0 : i32
    return %arg0, %c0_i32 : i32, i32
  }
  func.func @transform_4(%arg0: i32) -> (i32, i32) {
    %c0_i32 = arith.constant 0 : i32
    %c0_i32_0 = arith.constant 0 : i32
    return %arg0, %c0_i32 : i32, i32
  }
}

</mosaic_0001>

<bundles_post_ra>
// kernel: tpu_custom_call.1
= control target key start
LH: loop header
LB: loop body
LE: loop exit
PB: predicated region body
PF: predicated region fallthrough
CT: control target
= control target key end

     0   :  { %s680_s15 = smov 0   ;;  %s769_s0 = inlined_call_operand.vmem [shape: f32[128,64], index: 0, kind: input, shape index: {}]   ;;  %s770_s1 = inlined_call_operand.vmem [shape: f32[64,32], index: 1, kind: input, shape index: {}]   ;;  %s771_s2 = inlined_call_operand.vmem [shape: f32[64,2], index: 2, kind: input, shape index: {}]   ;;  %s772_s3 = inlined_call_operand.vmem [shape: f32[128,32], index: 3, kind: output, shape index: {0}]   ;;  %s773_s4 = inlined_call_operand.vmem [shape: f32[128,2], index: 4, kind: output, shape index: {1}]  }
   0x1 LB: > { %s518_s16 = sadd.s32 4294967295, %s653_s15   ;;  %p522_p0 = scmp.ge.s32.totalorder %s653_s15, 1  ;;  %s653_s15 = sphi %s680_s15, %s15_s15  }
   0x2   : > { %p166_p1 = scmp.lt.s32.totalorder %s653_s15, 5 }
   0x4   : > { %p167_p2 = pnand %p522_p0, %p166_p1 }
   0x5   : > { %v219_v0 = vld [vmem:[%s770_s1] sm:$0xff] (!%p167_p2)  ;;  %v220_v1 = vld [vmem:[%s770_s1 + $0x8] sm:$0xff] (!%p167_p2)  ;;  %s523_s23 = sshll.u32 (!%p167_p2), %s518_s16, 2  ;;  %v221_v5 = vld [vmem:[%s770_s1 + $0x10] sm:$0xff] (!%p167_p2)  ;;  %vm227_vm0 = vcmask (!%p167_p2), 523264   ;;  %vm325_vm1 = vcmask (!%p167_p2), 261120  }
   0x6   : > { %170 = sbr.rel (%p167_p2) target bundleno = 244 (0xf4), region = 32  ;;  %v330_v2 = vld [vmem:[%s771_s2] sm:$0xff] (!%p167_p2)  ;;  %v607_v3 = vpack.c.bf16 (!%p167_p2), %v220_v1, %v219_v0  ;;  %v331_v4 = vld [vmem:[%s771_s2 + $0x8] sm:$0xff] (!%p167_p2)  ;;  %v222_v6 = vld [vmem:[%s770_s1 + $0x18] sm:$0xff] (!%p167_p2)  ;;  %p198_p3 = scmp.lt.s32.totalorder (!%p167_p2), %s523_s23, 15  ;;  %vm423_vm2 = vcmask (!%p167_p2), 15360  }
   0x7   : > { %v623_v7 = vpack.c.bf16 (!%p167_p2), %v331_v4, %v330_v2  ;;  %v611_v8 = vpack.c.bf16 (!%p167_p2), %v222_v6, %v221_v5  ;;  %v332_v9 = vld [vmem:[%s771_s2 + $0x10] sm:$0xff] (!%p167_p2)  ;;  %v333_v10 = vld [vmem:[%s771_s2 + $0x18] sm:$0xff] (!%p167_p2)  ;;  %v223_v11 = vld [vmem:[%s770_s1 + $0x20] sm:$0xff] (!%p167_p2) }
   0x8   : > { %608 = vmatprep.subr.bf16.mxu0 (!%p167_p2), %v607_v3  ;;  %v627_v12 = vpack.c.bf16 (!%p167_p2), %v333_v10, %v332_v9  ;;  %v224_v13 = vld [vmem:[%s770_s1 + $0x28] sm:$0xff] (!%p167_p2)  ;;  %v334_v14 = vld [vmem:[%s771_s2 + $0x20] sm:$0xff] (!%p167_p2)  ;;  %v225_v18 = vld [vmem:[%s770_s1 + $0x30] sm:$0xff] (!%p167_p2) }
   0x9   : > { %v335_v15 = vld [vmem:[%s771_s2 + $0x28] sm:$0xff] (!%p167_p2)  ;;  %624 = vmatprep.subr.bf16.mxu1 (!%p167_p2), %v623_v7  ;;  %610 = vmatpush3.bf16.msra.mxu0 (!%p167_p2), %v607_v3  ;;  %v615_v16 = vpack.c.bf16 (!%p167_p2), %v224_v13, %v223_v11  ;;  %v226_v19 = vld [vmem:[%s770_s1 + $0x38] sm:$0xff] (!%p167_p2)  ;;  %v336_v20 = vld [vmem:[%s771_s2 + $0x30] sm:$0xff] (!%p167_p2) }
   0xa   : > { %626 = vmatpush3.bf16.msra.mxu1 (!%p167_p2), %v623_v7  ;;  %612 = vmatprep.subr.bf16.mxu0 (!%p167_p2), %v611_v8  ;;  %v631_v17 = vpack.c.bf16 (!%p167_p2), %v335_v15, %v334_v14  ;;  %v337_v21 = vld [vmem:[%s771_s2 + $0x38] sm:$0xff] (!%p167_p2)  ;;  %v619_v23 = vpack.c.bf16 (!%p167_p2), %v226_v19, %v225_v18 }
   0xb   : > { %628 = vmatprep.subr.bf16.mxu1 (!%p167_p2), %v627_v12  ;;  %v635_v24 = vpack.c.bf16 (!%p167_p2), %v337_v21, %v336_v20 }
   0xd   : > { %s775_s23 = smov (!%p198_p3, %s523_s23), 15  ;;  %614 = vmatpush3.bf16.msra.mxu0 %v611_v8 }
   0xe   : > { %s724_s17 = sshll.u32 %s775_s23, 3  ;;  %630 = vmatpush3.bf16.msra.mxu1 %v627_v12  ;;  %616 = vmatprep.subr.bf16.mxu0 %v615_v16 }
   0xf   : > { %s201_s25 = scalar_lea.vmem %s769_s0, %s724_s17  ;;  %632 = vmatprep.subr.bf16.mxu1 %v631_v17  ;;  %s207_s5 = scalar_lea.vmem %s772_s3, %s724_s17 }
  0x10   : > { %v215_v22 = vld [vmem:[%s201_s25] sm:$0xff]  ;;  %v216_v25 = vld [vmem:[%s201_s25 + $0x8] sm:$0xff]  ;;  %v217_v26 = vld [vmem:[%s201_s25 + $0x10] sm:$0xff]  ;;  %s213_s8 = scalar_lea.vmem %s773_s4, %s724_s17 }
  0x11   : > { %579 = vmatprep.mubr.msk.f32.mxu0 %vm227_vm0, %v215_v22  ;;  %601 = vmatprep.mubr.msk.f32.mxu1 %vm227_vm0, %v215_v22  ;;  %v218_v27 = vld [vmem:[%s201_s25 + $0x18] sm:$0xff] }
  0x12   : > { %618 = vmatpush3.bf16.msra.mxu0 %v615_v16  ;;  %634 = vmatpush3.bf16.msra.mxu1 %v631_v17 }
  0x13   : > { %620 = vmatprep.subr.bf16.mxu0 %v619_v23  ;;  %636 = vmatprep.subr.bf16.mxu1 %v635_v24 }
  0x16   : > { %622 = vmatpush3.bf16.msra.mxu0 %v619_v23  ;;  %638 = vmatpush3.bf16.msra.mxu1 %v635_v24 }
  0x19   : > { %580 = vmatmul.mubr.msk.f32.vlgmr.msra.gmra.mrb[0].mxu0 %vm227_vm0, %v216_v25  ;;  %602 = vmatmul.mubr.msk.f32.vlgmr.msra.gmra.mrb[0].mxu1 %vm227_vm0, %v216_v25 }
  0x1a   : > { %582 = vmatprep.mubr.msk.f32.mxu0 %vm227_vm0, %v217_v26  ;;  %604 = vmatprep.mubr.msk.f32.mxu1 %vm227_vm0, %v217_v26 }
  0x1d   : > { %583 = vmatmul.mubr.msk.f32.gmra.mrb[2].mxu0 %vm227_vm0, %v218_v27  ;;  %605 = vmatmul.mubr.msk.f32.gmra.mrb[2].mxu1 %vm227_vm0, %v218_v27 }
  0xec   : > { %v581_v28 = vpop.f32.mrb[0].mxu0  ;;  %v603_v29 = vpop.f32.mrb[0].mxu1 }
  0xed   : > { %327 = vst.msk [vmem:[%s207_s5 + $0x8] sm:$0xff] %vm325_vm1, %v581_v28  ;;  %v306_v30 = vpop.f32.mrb[1].mxu0  ;;  %v404_v31 = vpop.f32.mrb[1].mxu1 }
  0xee   : > { %425 = vst.msk [vmem:[%s213_s8 + $0x8] sm:$0xff] %vm423_vm2, %v603_v29  ;;  %424 = vst.msk [vmem:[%s213_s8] sm:$0xff] %vm423_vm2, %v404_v31 }
  0xef   : > { %326 = vst.msk [vmem:[%s207_s5] sm:$0xff] %vm325_vm1, %v306_v30 }
  0xf0   : > { %v584_v32 = vpop.f32.mrb[2].mxu0  ;;  %v606_v33 = vpop.f32.mrb[2].mxu1 }
  0xf1   : > { %329 = vst.msk [vmem:[%s207_s5 + $0x18] sm:$0xff] %vm325_vm1, %v584_v32  ;;  %v316_v34 = vpop.f32.mrb[3].mxu0  ;;  %v414_v35 = vpop.f32.mrb[3].mxu1 }
  0xf2   : > { %427 = vst.msk [vmem:[%s213_s8 + $0x18] sm:$0xff] %vm423_vm2, %v606_v33  ;;  %426 = vst.msk [vmem:[%s213_s8 + $0x10] sm:$0xff] %vm423_vm2, %v414_v35 }
  0xf3   : > { %328 = vst.msk [vmem:[%s207_s5 + $0x10] sm:$0xff] %vm325_vm1, %v316_v34 }
  0xf4 PF: > { %s15_s15 = sadd.s32 1, %s653_s15  }
  0xf5   : > { %p12_p4 = scmp.ge.s32.totalorder %s15_s15, 6  }
  0xf7   :  { %14 = sbr.rel (!%p12_p4) target bundleno = 1 (0x1), region = 74 }

</bundles_post_ra>
